<compile_context>
chip_gen: v7x
topology: tpu7x:2x2x1
jax: 0.10.0
libtpu: 0.0.40
codegen_flags: <defaults>
</compile_context>

<pallas_src>
import numpy as np
import jax
import jax.numpy as jnp
from jax.experimental import pallas as pl
from jax.experimental.pallas import tpu as pltpu


def gabor_filter_bank(x, A, mu, sigma, f, phi, t, kernel_size):
    """x: (B, 1, T) -> (B, num_filters, T), matching PyTorch F.conv1d(padding=K//2) semantics."""
    B, c_in, T = x.shape
    assert c_in == 1
    K = int(kernel_size)
    assert K % 2 == 1, "kernel_size must be odd to match PyTorch conv1d output length"
    F_ = A.shape[0]
    pad = K // 2

    # ---- Gabor bank built once in plain JAX (review item: frees the T axis to be parallel) ----
    t1 = t.reshape(1, K).astype(jnp.float32)
    A_ = A.reshape(-1, 1).astype(jnp.float32)
    mu_ = mu.reshape(-1, 1).astype(jnp.float32)
    sig = jnp.abs(sigma.reshape(-1, 1).astype(jnp.float32)) + 0.001
    fr = jnp.clip(f.reshape(-1, 1).astype(jnp.float32), 0.1, 30.0)
    ph = phi.reshape(-1, 1).astype(jnp.float32)
    gauss = jnp.exp(-((t1 - mu_) ** 2) / (2.0 * sig ** 2))
    sinus = jnp.cos(2.0 * jnp.pi * fr * t1 + ph)
    bank = A_ * gauss * sinus                                   # (F, K) float32

    # Split taps: first K_main (multiple of 8) go through the MXU, the remainder (1 for K=129)
    # are peeled onto the VPU so the contraction depth is exactly 128.
    K_main = (K // 8) * 8
    n_peel = K - K_main
    n_groups = K_main // 8
    assert K_main >= 8, "kernel tuned for kernel_size >= 9"
    Kb = 128 * pl.cdiv(K, 128)                                   # lane-padded bank width
    bank_pad = jnp.zeros((F_, Kb), jnp.float32).at[:, :K].set(bank)

    # ---- halo size & lane-dense T tile ----
    H = 128 * pl.cdiv(K - 1, 128)                                # halo block (128 for K=129)
    T_tile = min(1024, 128 * pl.cdiv(T, 128))                    # review item: bigger tiles
    T_tile = max(T_tile, H)
    T_tile = H * pl.cdiv(T_tile, H)                              # keep halo index_map block-aligned
    assert T_tile % 128 == 0 and T_tile % H == 0 and H >= K - 1
    nT = pl.cdiv(T, T_tile)
    T_p = nT * T_tile

    # Zero-padded input in one jnp.pad pass: [pad zeros | x | zeros], total length T_p + H
    # (only a 128-element tail beyond the rounded-up length — no extra full T_tile block).
    xpad = jnp.pad(x.astype(jnp.float32), ((0, 0), (0, 0), (pad, T_p + H - T - pad)))
    assert xpad.shape == (B, 1, T_p + H)

    halo_stride = T_tile // H

    def kernel(bank_ref, xc_ref, xh_ref, o_ref, cols_ref):
        # bank_ref: (F, Kb)       lane-padded Gabor bank (cols >= K are zero)
        # xc_ref  : (1, 1, T_tile) current padded-input block
        # xh_ref  : (1, 1, H)      128-element halo block
        # o_ref   : (1, F, T_tile) output tile
        # cols_ref: (K_main, T_tile) VMEM scratch for the Toeplitz operand
        cur = xc_ref[0]                                          # (1, T_tile)
        halo = xh_ref[0]                                         # (1, H)
        window = jnp.concatenate([cur, halo], axis=1)            # (1, T_tile + H)

        # base[s, j] = window[0, j + s]  — 8 shifted copies, built once per tile.
        L = T_tile + 8 * (n_groups - 1)
        base = jnp.concatenate([window[:, s:s + L] for s in range(8)], axis=0)   # (8, L)

        # Grouped im2col into persistent VMEM scratch: cols[8q + s, j] = window[0, j + 8q + s].
        # One 8-sublane lane slice + one aligned 8-row store per group (16 groups for K=129).
        for q in range(n_groups):
            cols_ref[8 * q:8 * (q + 1), :] = base[:, 8 * q:8 * q + T_tile]

        # Single MXU contraction over the first K_main taps, explicit full-f32 precision.
        acc = jnp.dot(bank_ref[:, :K_main], cols_ref[...],
                      preferred_element_type=jnp.float32,
                      precision=jax.lax.Precision.HIGHEST)       # (F, T_tile)

        # Peeled tail taps (1 for K=129) as VPU FMAs; window slice at lane offset K_main is
        # lane-aligned for the default K=129.
        for r in range(n_peel):
            k = K_main + r
            acc = acc + bank_ref[:, k:k + 1] * window[:, k:k + T_tile]

        o_ref[0] = acc.astype(o_ref.dtype)

    out = pl.pallas_call(
        kernel,
        out_shape=jax.ShapeDtypeStruct((B, F_, T_p), jnp.float32),
        grid=(B, nT),
        in_specs=[
            pl.BlockSpec((F_, Kb), lambda b, ti: (0, 0)),                    # Gabor bank (const)
            pl.BlockSpec((1, 1, T_tile), lambda b, ti: (b, 0, ti)),          # current block
            pl.BlockSpec((1, 1, H), lambda b, ti: (b, 0, (ti + 1) * halo_stride)),  # 128-wide halo
        ],
        out_specs=pl.BlockSpec((1, F_, T_tile), lambda b, ti: (b, 0, ti)),
        scratch_shapes=[pltpu.VMEM((K_main, T_tile), jnp.float32)],          # Toeplitz operand
        compiler_params=pltpu.CompilerParams(
            dimension_semantics=("parallel", "parallel"),
            vmem_limit_bytes=32 * 1024 * 1024),                              # explicit headroom
    )(bank_pad, xpad, xpad)

    return out[:, :, :T]


def _reference_np(x, A, mu, sigma, f, phi, t, kernel_size):
    """float64 NumPy reference with identical semantics (PyTorch conv1d = cross-correlation)."""
    x = np.asarray(x, np.float64)
    A = np.asarray(A, np.float64); mu = np.asarray(mu, np.float64)
    sigma = np.asarray(sigma, np.float64); f = np.asarray(f, np.float64)
    phi = np.asarray(phi, np.float64); t = np.asarray(t, np.float64)
    K = kernel_size; pad = K // 2
    t1 = t[None, :]
    sig = np.abs(sigma)[:, None] + 0.001
    fr = np.clip(f, 0.1, 30.0)[:, None]
    kern = (A[:, None] * np.exp(-(t1 - mu[:, None]) ** 2 / (2.0 * sig ** 2))
            * np.cos(2.0 * np.pi * fr * t1 + phi[:, None]))          # (F, K)
    B, _, T = x.shape
    xp = np.pad(x[:, 0, :], ((0, 0), (pad, pad)))                     # (B, T + 2*pad)
    out = np.zeros((B, A.shape[0], T))
    for k in range(K):
        out += kern[None, :, k:k + 1] * xp[:, None, k:k + T]
    return out


if __name__ == "__main__":
    # Module hyper-parameters (GaborFilterBank defaults)
    num_filters = 4
    kernel_size = 129
    sample_rate = 100.0

    # Deterministic parameter init, exactly as in __init__
    lo = float(-kernel_size // 2)      # -65
    hi = float(kernel_size // 2)       # 64
    t = (jnp.linspace(lo, hi, kernel_size) / sample_rate).astype(jnp.float32)
    A = jnp.ones((num_filters,), jnp.float32)
    mu = jnp.zeros((num_filters,), jnp.float32)
    sigma = jnp.ones((num_filters,), jnp.float32) * 0.1
    f = jnp.linspace(1.0, 15.0, num_filters).astype(jnp.float32)
    phi = jnp.zeros((num_filters,), jnp.float32)

    key = jax.random.PRNGKey(0)
    # Primary small case (B=2, T=128) + a multi-tile case that exercises the cross-tile halo path.
    for (B, T) in [(2, 128), (2, 3000)]:
        key, sub = jax.random.split(key)
        x = jax.random.normal(sub, (B, 1, T), dtype=jnp.float32)

        out = jax.block_until_ready(
            gabor_filter_bank(x, A, mu, sigma, f, phi, t, kernel_size))
        assert out.shape == (B, num_filters, T)

        ref = _reference_np(np.asarray(x), np.asarray(A), np.asarray(mu), np.asarray(sigma),
                            np.asarray(f), np.asarray(phi), np.asarray(t), kernel_size)
        np.testing.assert_allclose(np.asarray(out), ref, rtol=5e-3, atol=5e-3)

    print("KERNEL_OK")
</pallas_src>

<mosaic_0001>
module attributes {stable_mosaic.version = 11 : i64} {
  func.func @kernel(%arg0: i32, %arg1: i32, %arg2: memref<4x256xf32, #tpu.memory_space<vmem>>, %arg3: memref<1x1x128xf32, #tpu.memory_space<vmem>>, %arg4: memref<1x1x128xf32, #tpu.memory_space<vmem>>, %arg5: memref<1x4x128xf32, #tpu.memory_space<vmem>>, %arg6: memref<128x128xf32, #tpu.memory_space<vmem>>) attributes {dimension_semantics = [#tpu.dimension_semantics<parallel>, #tpu.dimension_semantics<parallel>], iteration_bounds = array<i64: 2, 1>, scalar_prefetch = 0 : i64, scratch_operands = 1 : i64, tpu.core_type = #tpu.core_type<tc>, window_params = [{pipeline_mode = #tpu.pipeline_mode<synchronous>, transform_indices = @transform_0, window_bounds = array<i64: 4, 256>}, {transform_indices = @transform_1, window_bounds = array<i64: 1, 1, 128>}, {transform_indices = @transform_2, window_bounds = array<i64: 1, 1, 128>}, {transform_indices = @transform_3, window_bounds = array<i64: 1, 4, 128>}]} {
    %c0 = arith.constant 0 : index
    %c0_0 = arith.constant 0 : index
    %c0_1 = arith.constant 0 : index
    %0 = vector.load %arg3[%c0, %c0_0, %c0_1] : memref<1x1x128xf32, #tpu.memory_space<vmem>>, vector<1x1x128xf32>
    %1 = vector.shape_cast %0 : vector<1x1x128xf32> to vector<1x128xf32>
    %c0_2 = arith.constant 0 : index
    %c0_3 = arith.constant 0 : index
    %c0_4 = arith.constant 0 : index
    %2 = vector.load %arg4[%c0_2, %c0_3, %c0_4] : memref<1x1x128xf32, #tpu.memory_space<vmem>>, vector<1x1x128xf32>
    %3 = vector.shape_cast %2 : vector<1x1x128xf32> to vector<1x128xf32>
    %4 = tpu.concatenate %1, %3 in 1 : vector<1x128xf32>, vector<1x128xf32> -> vector<1x256xf32>
    %5 = vector.extract_strided_slice %4 {offsets = [0, 0], sizes = [1, 248], strides = [1, 1]} : vector<1x256xf32> to vector<1x248xf32>
    %6 = vector.extract_strided_slice %4 {offsets = [0, 1], sizes = [1, 248], strides = [1, 1]} : vector<1x256xf32> to vector<1x248xf32>
    %7 = vector.extract_strided_slice %4 {offsets = [0, 2], sizes = [1, 248], strides = [1, 1]} : vector<1x256xf32> to vector<1x248xf32>
    %8 = vector.extract_strided_slice %4 {offsets = [0, 3], sizes = [1, 248], strides = [1, 1]} : vector<1x256xf32> to vector<1x248xf32>
    %9 = vector.extract_strided_slice %4 {offsets = [0, 4], sizes = [1, 248], strides = [1, 1]} : vector<1x256xf32> to vector<1x248xf32>
    %10 = vector.extract_strided_slice %4 {offsets = [0, 5], sizes = [1, 248], strides = [1, 1]} : vector<1x256xf32> to vector<1x248xf32>
    %11 = vector.extract_strided_slice %4 {offsets = [0, 6], sizes = [1, 248], strides = [1, 1]} : vector<1x256xf32> to vector<1x248xf32>
    %12 = vector.extract_strided_slice %4 {offsets = [0, 7], sizes = [1, 248], strides = [1, 1]} : vector<1x256xf32> to vector<1x248xf32>
    %13 = tpu.concatenate %5, %6, %7, %8, %9, %10, %11, %12 in 0 : vector<1x248xf32>, vector<1x248xf32>, vector<1x248xf32>, vector<1x248xf32>, vector<1x248xf32>, vector<1x248xf32>, vector<1x248xf32>, vector<1x248xf32> -> vector<8x248xf32>
    %14 = vector.extract_strided_slice %13 {offsets = [0, 0], sizes = [8, 128], strides = [1, 1]} : vector<8x248xf32> to vector<8x128xf32>
    %c0_5 = arith.constant 0 : index
    %c0_6 = arith.constant 0 : index
    %15 = vector.load %arg6[%c0_5, %c0_6] : memref<128x128xf32, #tpu.memory_space<vmem>>, vector<8x128xf32>
    tpu.vector_store %arg6[%c0_5, %c0_6], %14 {strides = array<i32>} : memref<128x128xf32, #tpu.memory_space<vmem>>, vector<8x128xf32>,
    %16 = vector.extract_strided_slice %13 {offsets = [0, 8], sizes = [8, 128], strides = [1, 1]} : vector<8x248xf32> to vector<8x128xf32>
    %c8 = arith.constant 8 : index
    %c0_7 = arith.constant 0 : index
    %17 = vector.load %arg6[%c8, %c0_7] : memref<128x128xf32, #tpu.memory_space<vmem>>, vector<8x128xf32>
    tpu.vector_store %arg6[%c8, %c0_7], %16 {strides = array<i32>} : memref<128x128xf32, #tpu.memory_space<vmem>>, vector<8x128xf32>,
    %18 = vector.extract_strided_slice %13 {offsets = [0, 16], sizes = [8, 128], strides = [1, 1]} : vector<8x248xf32> to vector<8x128xf32>
    %c16 = arith.constant 16 : index
    %c0_8 = arith.constant 0 : index
    %19 = vector.load %arg6[%c16, %c0_8] : memref<128x128xf32, #tpu.memory_space<vmem>>, vector<8x128xf32>
    tpu.vector_store %arg6[%c16, %c0_8], %18 {strides = array<i32>} : memref<128x128xf32, #tpu.memory_space<vmem>>, vector<8x128xf32>,
    %20 = vector.extract_strided_slice %13 {offsets = [0, 24], sizes = [8, 128], strides = [1, 1]} : vector<8x248xf32> to vector<8x128xf32>
    %c24 = arith.constant 24 : index
    %c0_9 = arith.constant 0 : index
    %21 = vector.load %arg6[%c24, %c0_9] : memref<128x128xf32, #tpu.memory_space<vmem>>, vector<8x128xf32>
    tpu.vector_store %arg6[%c24, %c0_9], %20 {strides = array<i32>} : memref<128x128xf32, #tpu.memory_space<vmem>>, vector<8x128xf32>,
    %22 = vector.extract_strided_slice %13 {offsets = [0, 32], sizes = [8, 128], strides = [1, 1]} : vector<8x248xf32> to vector<8x128xf32>
    %c32 = arith.constant 32 : index
    %c0_10 = arith.constant 0 : index
    %23 = vector.load %arg6[%c32, %c0_10] : memref<128x128xf32, #tpu.memory_space<vmem>>, vector<8x128xf32>
    tpu.vector_store %arg6[%c32, %c0_10], %22 {strides = array<i32>} : memref<128x128xf32, #tpu.memory_space<vmem>>, vector<8x128xf32>,
    %24 = vector.extract_strided_slice %13 {offsets = [0, 40], sizes = [8, 128], strides = [1, 1]} : vector<8x248xf32> to vector<8x128xf32>
    %c40 = arith.constant 40 : index
    %c0_11 = arith.constant 0 : index
    %25 = vector.load %arg6[%c40, %c0_11] : memref<128x128xf32, #tpu.memory_space<vmem>>, vector<8x128xf32>
    tpu.vector_store %arg6[%c40, %c0_11], %24 {strides = array<i32>} : memref<128x128xf32, #tpu.memory_space<vmem>>, vector<8x128xf32>,
    %26 = vector.extract_strided_slice %13 {offsets = [0, 48], sizes = [8, 128], strides = [1, 1]} : vector<8x248xf32> to vector<8x128xf32>
    %c48 = arith.constant 48 : index
    %c0_12 = arith.constant 0 : index
    %27 = vector.load %arg6[%c48, %c0_12] : memref<128x128xf32, #tpu.memory_space<vmem>>, vector<8x128xf32>
    tpu.vector_store %arg6[%c48, %c0_12], %26 {strides = array<i32>} : memref<128x128xf32, #tpu.memory_space<vmem>>, vector<8x128xf32>,
    %28 = vector.extract_strided_slice %13 {offsets = [0, 56], sizes = [8, 128], strides = [1, 1]} : vector<8x248xf32> to vector<8x128xf32>
    %c56 = arith.constant 56 : index
    %c0_13 = arith.constant 0 : index
    %29 = vector.load %arg6[%c56, %c0_13] : memref<128x128xf32, #tpu.memory_space<vmem>>, vector<8x128xf32>
    tpu.vector_store %arg6[%c56, %c0_13], %28 {strides = array<i32>} : memref<128x128xf32, #tpu.memory_space<vmem>>, vector<8x128xf32>,
    %30 = vector.extract_strided_slice %13 {offsets = [0, 64], sizes = [8, 128], strides = [1, 1]} : vector<8x248xf32> to vector<8x128xf32>
    %c64 = arith.constant 64 : index
    %c0_14 = arith.constant 0 : index
    %31 = vector.load %arg6[%c64, %c0_14] : memref<128x128xf32, #tpu.memory_space<vmem>>, vector<8x128xf32>
    tpu.vector_store %arg6[%c64, %c0_14], %30 {strides = array<i32>} : memref<128x128xf32, #tpu.memory_space<vmem>>, vector<8x128xf32>,
    %32 = vector.extract_strided_slice %13 {offsets = [0, 72], sizes = [8, 128], strides = [1, 1]} : vector<8x248xf32> to vector<8x128xf32>
    %c72 = arith.constant 72 : index
    %c0_15 = arith.constant 0 : index
    %33 = vector.load %arg6[%c72, %c0_15] : memref<128x128xf32, #tpu.memory_space<vmem>>, vector<8x128xf32>
    tpu.vector_store %arg6[%c72, %c0_15], %32 {strides = array<i32>} : memref<128x128xf32, #tpu.memory_space<vmem>>, vector<8x128xf32>,
    %34 = vector.extract_strided_slice %13 {offsets = [0, 80], sizes = [8, 128], strides = [1, 1]} : vector<8x248xf32> to vector<8x128xf32>
    %c80 = arith.constant 80 : index
    %c0_16 = arith.constant 0 : index
    %35 = vector.load %arg6[%c80, %c0_16] : memref<128x128xf32, #tpu.memory_space<vmem>>, vector<8x128xf32>
    tpu.vector_store %arg6[%c80, %c0_16], %34 {strides = array<i32>} : memref<128x128xf32, #tpu.memory_space<vmem>>, vector<8x128xf32>,
    %36 = vector.extract_strided_slice %13 {offsets = [0, 88], sizes = [8, 128], strides = [1, 1]} : vector<8x248xf32> to vector<8x128xf32>
    %c88 = arith.constant 88 : index
    %c0_17 = arith.constant 0 : index
    %37 = vector.load %arg6[%c88, %c0_17] : memref<128x128xf32, #tpu.memory_space<vmem>>, vector<8x128xf32>
    tpu.vector_store %arg6[%c88, %c0_17], %36 {strides = array<i32>} : memref<128x128xf32, #tpu.memory_space<vmem>>, vector<8x128xf32>,
    %38 = vector.extract_strided_slice %13 {offsets = [0, 96], sizes = [8, 128], strides = [1, 1]} : vector<8x248xf32> to vector<8x128xf32>
    %c96 = arith.constant 96 : index
    %c0_18 = arith.constant 0 : index
    %39 = vector.load %arg6[%c96, %c0_18] : memref<128x128xf32, #tpu.memory_space<vmem>>, vector<8x128xf32>
    tpu.vector_store %arg6[%c96, %c0_18], %38 {strides = array<i32>} : memref<128x128xf32, #tpu.memory_space<vmem>>, vector<8x128xf32>,
    %40 = vector.extract_strided_slice %13 {offsets = [0, 104], sizes = [8, 128], strides = [1, 1]} : vector<8x248xf32> to vector<8x128xf32>
    %c104 = arith.constant 104 : index
    %c0_19 = arith.constant 0 : index
    %41 = vector.load %arg6[%c104, %c0_19] : memref<128x128xf32, #tpu.memory_space<vmem>>, vector<8x128xf32>
    tpu.vector_store %arg6[%c104, %c0_19], %40 {strides = array<i32>} : memref<128x128xf32, #tpu.memory_space<vmem>>, vector<8x128xf32>,
    %42 = vector.extract_strided_slice %13 {offsets = [0, 112], sizes = [8, 128], strides = [1, 1]} : vector<8x248xf32> to vector<8x128xf32>
    %c112 = arith.constant 112 : index
    %c0_20 = arith.constant 0 : index
    %43 = vector.load %arg6[%c112, %c0_20] : memref<128x128xf32, #tpu.memory_space<vmem>>, vector<8x128xf32>
    tpu.vector_store %arg6[%c112, %c0_20], %42 {strides = array<i32>} : memref<128x128xf32, #tpu.memory_space<vmem>>, vector<8x128xf32>,
    %44 = vector.extract_strided_slice %13 {offsets = [0, 120], sizes = [8, 128], strides = [1, 1]} : vector<8x248xf32> to vector<8x128xf32>
    %c120 = arith.constant 120 : index
    %c0_21 = arith.constant 0 : index
    %45 = vector.load %arg6[%c120, %c0_21] : memref<128x128xf32, #tpu.memory_space<vmem>>, vector<8x128xf32>
    tpu.vector_store %arg6[%c120, %c0_21], %44 {strides = array<i32>} : memref<128x128xf32, #tpu.memory_space<vmem>>, vector<8x128xf32>,
    %c0_22 = arith.constant 0 : index
    %c0_23 = arith.constant 0 : index
    %46 = vector.load %arg2[%c0_22, %c0_23] : memref<4x256xf32, #tpu.memory_space<vmem>>, vector<4x128xf32>
    %c0_24 = arith.constant 0 : index
    %c0_25 = arith.constant 0 : index
    %47 = vector.load %arg6[%c0_24, %c0_25] : memref<128x128xf32, #tpu.memory_space<vmem>>, vector<128x128xf32>
    %cst = arith.constant dense<0.000000e+00> : vector<4x128xf32>
    %48 = tpu.matmul %46, %47, %cst {dimension_numbers = #tpu.dot_dimension_numbers<[1], [0], [0], [1], [0, 0, 1, 1], [], []>, precision = #tpu.contract_precision<fp32>} : vector<4x128xf32>, vector<128x128xf32>, vector<4x128xf32> -> vector<4x128xf32>
    %c0_26 = arith.constant 0 : index
    %c128 = arith.constant 128 : index
    %49 = vector.load %arg2[%c0_26, %c128] : memref<4x256xf32, #tpu.memory_space<vmem>>, vector<4x1xf32>
    %50 = vector.extract_strided_slice %4 {offsets = [0, 128], sizes = [1, 128], strides = [1, 1]} : vector<1x256xf32> to vector<1x128xf32>
    %51 = vector.broadcast %49 : vector<4x1xf32> to vector<4x128xf32>
    %52 = vector.broadcast %50 : vector<1x128xf32> to vector<4x128xf32>
    %53 = arith.mulf %51, %52 : vector<4x128xf32>
    %54 = arith.addf %48, %53 : vector<4x128xf32>
    %c0_27 = arith.constant 0 : index
    %c0_28 = arith.constant 0 : index
    %c0_29 = arith.constant 0 : index
    %55 = vector.load %arg5[%c0_27, %c0_28, %c0_29] : memref<1x4x128xf32, #tpu.memory_space<vmem>>, vector<1x4x128xf32>
    %56 = vector.shape_cast %55 : vector<1x4x128xf32> to vector<4x128xf32>
    %57 = vector.shape_cast %54 : vector<4x128xf32> to vector<1x4x128xf32>
    tpu.vector_store %arg5[%c0_27, %c0_28, %c0_29], %57 {strides = array<i32>} : memref<1x4x128xf32, #tpu.memory_space<vmem>>, vector<1x4x128xf32>,
    return
  }
  func.func @transform_0(%arg0: i32, %arg1: i32) -> (i32, i32) {
    %c0_i32 = arith.constant 0 : i32
    %c0_i32_0 = arith.constant 0 : i32
    %c0_i32_1 = arith.constant 0 : i32
    return %c0_i32, %c0_i32_0 : i32, i32
  }
  func.func @transform_1(%arg0: i32, %arg1: i32) -> (i32, i32, i32) {
    %c0_i32 = arith.constant 0 : i32
    %c0_i32_0 = arith.constant 0 : i32
    return %arg0, %c0_i32, %arg1 : i32, i32, i32
  }
  func.func @transform_2(%arg0: i32, %arg1: i32) -> (i32, i32, i32) {
    %c1_i32 = arith.constant 1 : i32
    %0 = arith.addi %arg1, %c1_i32 : i32
    %c1_i32_0 = arith.constant 1 : i32
    %1 = arith.muli %0, %c1_i32_0 : i32
    %c0_i32 = arith.constant 0 : i32
    %c0_i32_1 = arith.constant 0 : i32
    return %arg0, %c0_i32, %1 : i32, i32, i32
  }
  func.func @transform_3(%arg0: i32, %arg1: i32) -> (i32, i32, i32) {
    %c0_i32 = arith.constant 0 : i32
    %c0_i32_0 = arith.constant 0 : i32
    return %arg0, %c0_i32, %arg1 : i32, i32, i32
  }
}

</mosaic_0001>

<bundles_post_ra>
// kernel: tpu_custom_call.1
= control target key start
LH: loop header
LB: loop body
LE: loop exit
PB: predicated region body
PF: predicated region fallthrough
CT: control target
= control target key end

     0   :  { %8 = vsyncpa [#allocation4], 0  ;;  %s2618_s0 = inlined_call_operand.hbm [shape: f32[4,256], index: 0, kind: input, shape index: {}]   ;;  %s2619_s1 = inlined_call_operand.hbm [shape: f32[2,1,256], index: 1, kind: input, shape index: {}]   ;;  %s2620_s2 = inlined_call_operand.vmem [shape: f32[2,1,256], index: 2, kind: input, shape index: {}]   ;;  %s2621_s3 = inlined_call_operand.hbm [shape: f32[2,4,128], index: 3, kind: output, shape index: {}]  }
   0x1   :  { %9 = vsyncpa [#allocation7], 0 }
   0x2   :  { %11 = vsyncpa [#allocation7 + $0x1], 0 }
   0x3   :  { %12 = vsyncpa [#allocation5], 0 }
   0x4   :  { %14 = vsyncpa [#allocation5 + $0x1], 0  ;;  %s2043_s12 = smov 0   ;;  %s2045_s13 = smov 0  }
   0x5   :  { %s2047_s14 = smov 0   ;;  %s2049_s15 = smov 0  }
   0x6   :  { %s2051_s16 = smov 0   ;;  %s2053_s17 = smov 0  }
   0x7 LB: > { %s1264_s18 = sadd.s32 4294967295, %s1991_s17   ;;  %s1265_s19 = sadd.s32 4294967294, %s1991_s17   ;;  %s1991_s17 = sphi %s2053_s17, %s20_s17   ;;  %s1987_s16 = sphi %s2051_s16, %s2646_s16   ;;  %s1983_s15 = sphi %s2049_s15, %s2645_s15   ;;  %s1979_s14 = sphi %s2047_s14, %s2644_s14   ;;  %s1975_s13 = sphi %s2045_s13, %s2643_s13   ;;  %s1971_s12 = sphi %s2043_s12, %s2642_s12  }
   0x8   : > { %p75_p0 = scmp.ne.s32.totalorder %s1975_s13, %s1971_s12  ;;  %p2077_p1 = scmp.eq.s32.totalorder %s1264_s18, 0 }
   0x9   : > { %p2081_p2 = scmp.eq.s32.totalorder %s1264_s18, 1  ;;  %p137_p3 = scmp.eq.s32.totalorder %s1265_s19, 1 }
   0xa   : > { %s2626_s20 = scalar_select %p2077_p1, 1, 0 }
   0xb   : > { %s2627_s21 = scalar_select %p2081_p2, 1, 0 }
   0xc   : > { %p2087_p4 = por %p2077_p1, %p75_p0  ;;  %p1266_p5 = scmp.ge.s32.totalorder %s1991_s17, 1 }
   0xd   : > { %p2092_p6 = por %p137_p3, %p75_p0  ;;  %p144_p7 = scmp.lt.s32.totalorder %s1991_s17, 3 }
   0xe   : > { %s2628_s22 = scalar_select %p2087_p4, 1, 0 }
   0xf   : > { %s2629_s23 = scalar_select %p2092_p6, 1, 0 }
  0x10   : > { %p2097_p8 = pnand %p1266_p5, %p144_p7  ;;  %s1993_s25 = smov [#allocation3]  }
  0x11   : > { %s157_s26 = sshll.u32 %s1993_s25, 4  ;;  %s32_s28 = sadd.s32 1, %s1987_s16  ;;  %s158_s26 = int_to_ptr.vmem [resolvable:$true] %s157_s26 }
  0x12   : > { %s2630_s24 = scalar_select %p2097_p8, 1, 0 }
  0x13   : > { %p1754_p10 = pneg %p2097_p8  ;;  %s62_s29 = sadd.s32 1, %s1979_s14 }
  0x14   : > { %p2112_p12 = scmp.ge.s32.totalorder %s32_s28, 2  ;;  %s1847_s6 = scalar_lea.hbm %s2618_s0, 128 }
  0x15   : > { %p2106_p11 = pnand %p1754_p10, %p2077_p1  ;;  %p1848_p13 = scmp.ne.s32.totalorder %s2618_s0, %s1847_s6 }
  0x16   : > { %s2632_s30 = scalar_select %p2112_p12, 1, 0 }
  0x17   : > { %p1849_p0 = pneg %p2106_p11  ;;  %p1854_p7 = scmp.lt.u32.totalorder %s1847_s6, %s2618_s0 }
  0x19   : > { %p1850_p3 = pnand %p1849_p0, %p1848_p13 }
  0x1b   : > { %p1851_p5 = pneg %p1850_p3 }
  0x1d   : > { %p1856_p10 = pnand %p1854_p7, %p1851_p5 }
  0x1f   : > { %1859 = shalt.err (!%p1856_p10)
}
  0x20   : > { %s1860_s11 = scalar_lea.vmem %s158_s26, 128  ;;  %p1868_p1 = scmp.lt.s32.totalorder %s158_s26, %s158_s26 }
  0x21   : > { %p1861_p9 = scmp.ne.s32.totalorder %s158_s26, %s1860_s11  ;;  %p1869_p8 = scmp.lt.s32.totalorder %s1860_s11, %s1860_s11 }
  0x23   : > { %p1863_p6 = pnand %p1861_p9, %p1849_p0  ;;  %p1870_p2 = por %p1869_p8, %p1868_p1 }
  0x25   : > { %p1864_p4 = pneg %p1863_p6 }
  0x27   : > { %p1871_p12 = pnand %p1870_p2, %p1864_p4 }
  0x29   : > { %1874 = shalt.err (!%p1871_p12)
}
  0x2a   : > { %1757 = dma.hbm_to_vmem [thread:$0]  (!%p2106_p11), %s2618_s0, 128, %s158_s26, [#allocation4]  }
  0x2b   : > { %p2633_p1 = scmp.ne.s32.totalorder %s2632_s30, 0  ;;  %p69_p2 = scmp.ne.s32.totalorder %s1979_s14, %s1975_s13 }
  0x2c   : > { %p70_p4 = scmp.eq.s32.totalorder %s1991_s17, 0  ;;  %p1767_p6 = scmp.lt.s32.totalorder %s1991_s17, 2 }
  0x2d   : > { %s2648_s28 = smov (%p2633_p1, %s32_s28), 0  ;;  %p2634_p12 = scmp.ne.s32.totalorder %s2627_s21, 0 }
  0x2e   : > { %s57_s25 = ssub.s32 %s1987_s16, %s2648_s28  ;;  %p71_p9 = por %p70_p4, %p69_p2 }
  0x2f   : > { %p60_p8 = scmp.eq.s32.totalorder %s57_s25, 0  ;;  %p2144_p13 = por %p2634_p12, %p69_p2 }
  0x30   : > { %s168_s4 = sand.u32 1, %s1979_s14   ;;  %s1279_s26 = sshll.u32 %s1987_s16, 5 }
  0x31   : > { %s2152_s5 = scalar_select %p60_p8, %s1979_s14, %s62_s29  }
  0x32   : > { %s171_s30 = scalar_lea.vmem [#allocation6], %s168_s4  ;;  %s2158_s9 = scalar_lea.hbm %s2619_s1, %s1279_s26 }
  0x33   : > { %s180_s6 = sshll.u32 %s171_s30, 4  ;;  %p2162_p11 = pnand %p1767_p6, %p71_p9  ;;  %s2160_s6 = int_to_ptr.vmem [resolvable:$true] %s180_s6 }
  0x34   : > { %s169_s29 = scalar_lea.sflag [#allocation7], %s168_s4  ;;  %s1875_s10 = scalar_lea.hbm %s2158_s9, 16 }
  0x35   : > { %p1876_p0 = scmp.ne.s32.totalorder %s2158_s9, %s1875_s10  ;;  %p1877_p3 = pneg %p2162_p11 }
  0x36   : > { %s1880_s19 = scalar_lea.hbm %s2619_s1, 64  ;;  %p1881_p10 = scmp.lt.u32.totalorder %s2158_s9, %s2619_s1 }
  0x37   : > { %p1878_p5 = pnand %p1877_p3, %p1876_p0  ;;  %p1882_p1 = scmp.lt.u32.totalorder %s1880_s19, %s1875_s10 }
  0x38   : > { %p1884_p4 = scmp.lt.u32.totalorder %s1875_s10, %s2158_s9 }
  0x39   : > { %p1879_p7 = pneg %p1878_p5  ;;  %p1883_p2 = por %p1882_p1, %p1881_p10 }
  0x3b   : > { %p1885_p6 = por %p1884_p4, %p1883_p2 }
  0x3d   : > { %p1886_p8 = pnand %p1885_p6, %p1879_p7 }
  0x3f   : > { %1889 = shalt.err (!%p1886_p8)
}
  0x40   : > { %s1890_s4 = scalar_lea.vmem %s2160_s6, 16  ;;  %s1994_s30 = smov [#allocation6]  }
  0x41   : > { %p1891_p9 = scmp.ne.s32.totalorder %s2160_s6, %s1890_s4  ;;  %s1895_s7 = sshll.u32 %s1994_s30, 4  ;;  %s1896_s7 = int_to_ptr.vmem [resolvable:$false] %s1895_s7 }
  0x42   : > { %s1897_s8 = scalar_lea.vmem %s1896_s7, 32  ;;  %p1898_p5 = scmp.lt.s32.totalorder %s2160_s6, %s1896_s7 }
  0x43   : > { %p1893_p12 = pnand %p1891_p9, %p1877_p3  ;;  %p1899_p10 = scmp.lt.s32.totalorder %s1897_s8, %s1890_s4 }
  0x45   : > { %p1894_p0 = pneg %p1893_p12  ;;  %p1900_p1 = por %p1899_p10, %p1898_p5 }
  0x47   : > { %p1901_p2 = pnand %p1900_p1, %p1894_p0 }
  0x49   : > { %1904 = shalt.err (!%p1901_p2)
}
  0x4a   : > { %1761 = dma.hbm_to_vmem [thread:$0]  (!%p2162_p11), %s2158_s9, 16, %s2160_s6, %s169_s29  }
  0x4b   : > { %p2637_p7 = scmp.ne.s32.totalorder %s2630_s24, 0 }
  0x4c   : > { %p2638_p3 = scmp.ne.s32.totalorder (!%p2637_p7), %s2626_s20, 0 }
  0x4d   : > { %201 = sbr.rel (%p2637_p7) target bundleno = 708 (0x2c4), region = 32 }
  0x54   : > { %1958 = dma.done.wait (%p2638_p3), [#allocation4], 128  }
  0x55   : > { %1960 = vsyncadd (%p2638_p3), [#allocation4], 4294967168  ;;  %s2198_s10 = sand.u32 1, %s1975_s13   ;;  %p2639_p4 = scmp.ne.s32.totalorder %s2628_s22, 0 }
  0x56   : > { %s208_s11 = scalar_lea.sflag [#allocation7], %s2198_s10  ;;  %s210_s21 = scalar_lea.vmem [#allocation6], %s2198_s10 }
  0x57   : > { %1962 = dma.done.wait (%p2639_p4), %s208_s11, 16  }
  0x58   : > { %1964 = vsyncadd (%p2639_p4), %s208_s11, 4294967280  ;;  %p241_p11 = scmp.lt.s32.totalorder %s1983_s15, 1  ;;  %v249_v0 = vld [vmem:[%s210_s21] sm:$0x1]  ;;  %s1995_s19 = smov 126   ;;  %vm259_vm0 = vcmask 1039360  }
  0x59   : > { %v263_v1 = vrot.slane %v249_v0, 6  ;;  %v253_v2 = vrot.slane %v249_v0, 7  ;;  %s1996_s25 = smov 127   ;;  %v273_v7 = vrot.slane %v249_v0, 5  ;;  %s1997_s22 = smov 125   ;;  %v283_v9 = vrot.slane %v249_v0, 4 }
  0x5a   : > { %s242_s24 = scalar_select %p241_p11, %s1983_s15, 1  ;;  %v293_v11 = vrot.slane %v249_v0, 3  ;;  %v303_v13 = vrot.slane %v249_v0, 2  ;;  %v313_v15 = vrot.slane %v249_v0, 1  ;;  %vm323_vm1 = vcmask 1040384  }
  0x5b   : > { %265 = vrot.lane.b32.xlu1 %v263_v1, %s1995_s19  ;;  %255 = vrot.lane.b32.xlu0 %v253_v2, %s1996_s25  ;;  %s1998_s26 = smov 124   ;;  %s1999_s4 = smov 123   ;;  %vm269_vm2 = vcmask 1031168   ;;  %vm279_vm3 = vcmask 1022976   ;;  %vm326_vm4 = vcmask 1041408   ;;  %vm289_vm5 = vcmask 1014784  }
  0x5c   : > { %s1274_s6 = sshll.u32 %s242_s24, 1  ;;  %s2000_s30 = smov 122   ;;  %vm329_vm6 = vcmask 1042432   ;;  %vm299_vm7 = vcmask 1006592   ;;  %v2002_v30 = vmov 0.0|0.0   ;;  %vm332_vm8 = vcmask 1043456  }
  0x5d   : > { %s246_s20 = sadd.s32 1, %s1274_s6  ;;  %s2001_s7 = smov 121   ;;  %1592 = vmatprep.subr.bf16.mxu1 %v2002_v30  ;;  %1664 = vmatprep.subr.bf16.mxu0 %v2002_v30  ;;  %vm309_vm9 = vcmask 998400   ;;  %vm335_vm10 = vcmask 1044480   ;;  %vm338_vm11 = vcmask 1045504   ;;  %vm341_vm12 = vcmask 1046528  }
  0x5e   : > { %s247_s18 = scalar_lea.vmem %s2620_s2, %s246_s20  ;;  %vm319_vm13 = vcmask 990208   ;;  %s2003_s8 = smov 120   ;;  %vm2017_vm14 = vmmov 0   ;;  %v2018_v52 = vmov 0.0   ;;  %vm351_vm15 = vcmask 982016  }
  0x5f   : > { %v2211_v3 = vld [vmem:[%s247_s18] sm:$0x1]  ;;  %s2004_s11 = smov 112   ;;  %s2005_s21 = smov 104   ;;  %1414 = vmatprep.mubr.msk.f32.mxu1 %vm2017_vm14, %v2018_v52  ;;  %1519 = vmatprep.mubr.msk.f32.mxu0 %vm2017_vm14, %v2018_v52  ;;  %v484_v56 = vld [vmem:[#allocation3 + $0x4] sm:$0xf] }
  0x60   : > { %v264_v4 = vrot.slane %v2211_v3, 6  ;;  %v254_v5 = vrot.slane %v2211_v3, 7  ;;  %v274_v6 = vrot.slane %v2211_v3, 5  ;;  %v284_v8 = vrot.slane %v2211_v3, 4  ;;  %s2006_s24 = smov 96   ;;  %s2007_s6 = smov 88  }
  0x61   : > { %v294_v10 = vrot.slane %v2211_v3, 3  ;;  %v304_v12 = vrot.slane %v2211_v3, 2  ;;  %v314_v14 = vrot.slane %v2211_v3, 1  ;;  %s2008_s20 = smov 80   ;;  %s2009_s9 = smov 72   ;;  %v2020_v59 = vmov 0  }
  0x62   : > { %267 = vrot.lane.b32.xlu1 %v264_v4, %s1995_s19  ;;  %257 = vrot.lane.b32.xlu0 %v254_v5, %s1996_s25  ;;  %s2010_s29 = smov 64   ;;  %s2011_s18 = smov 56  }
  0x63   : > { %s2012_s19 = smov 48   ;;  %s2013_s25 = smov 40   ;;  %1846 = vset.pattern.permute.xlu0 %v2020_v59 }
  0x66   : > { %277 = vrot.lane.b32.xlu1 %v274_v6, %s1997_s22  ;;  %275 = vrot.lane.b32.xlu0 %v273_v7, %s1997_s22  ;;  %s2014_s22 = smov 32  }
  0x6a   : > { %287 = vrot.lane.b32.xlu1 %v284_v8, %s1998_s26  ;;  %285 = vrot.lane.b32.xlu0 %v283_v9, %s1998_s26  ;;  %s2015_s26 = smov 24  }
  0x6e   : > { %297 = vrot.lane.b32.xlu1 %v294_v10, %s1999_s4  ;;  %295 = vrot.lane.b32.xlu0 %v293_v11, %s1999_s4  ;;  %s2016_s4 = smov 16  }
  0x72   : > { %307 = vrot.lane.b32.xlu1 %v304_v12, %s2000_s30  ;;  %305 = vrot.lane.b32.xlu0 %v303_v13, %s2000_s30  ;;  %s2019_s30 = smov 8  }
  0x76   : > { %317 = vrot.lane.b32.xlu1 %v314_v14, %s2001_s7  ;;  %315 = vrot.lane.b32.xlu0 %v313_v15, %s2001_s7  ;;  %s1273_s7 = sshll.u32 %s2198_s10, 2 }
  0xcd   : > { %v266_v16 = vpop.permute.xlu1 %265  ;;  %v256_v17 = vpop.permute.xlu0 %255 }
  0xd4   : > { %v268_v18 = vpop.permute.xlu1 %267  ;;  %v258_v19 = vpop.permute.xlu0 %257 }
  0xd5   : > { %v260_v24 = vsel %vm259_vm0, %v256_v17, %v258_v19  ;;  %v325_v27 = vsel %vm323_vm1, %v2211_v3, %v258_v19  ;;  %v270_v28 = vsel %vm269_vm2, %v266_v16, %v268_v18  ;;  %vm359_vm0 = vcmask 916480  }
  0xd6   : > { %v324_v29 = vsel %vm323_vm1, %v249_v0, %v260_v24  ;;  %v328_v32 = vsel %vm326_vm4, %v325_v27, %v268_v18  ;;  %vm367_vm1 = vcmask 850944   ;;  %vm375_vm2 = vcmask 785408  }
  0xd7   : > { %v327_v37 = vsel %vm326_vm4, %v324_v29, %v270_v28  ;;  %vm391_vm4 = vcmask 654336  }
  0xd8   : > { %v278_v20 = vpop.permute.xlu1 %277  ;;  %v276_v21 = vpop.permute.xlu0 %275 }
  0xd9   : > { %v280_v31 = vsel %vm279_vm3, %v276_v21, %v278_v20  ;;  %v331_v36 = vsel %vm329_vm6, %v328_v32, %v278_v20  ;;  %vm383_vm3 = vcmask 719872  }
  0xda   : > { %v330_v39 = vsel %vm329_vm6, %v327_v37, %v280_v31  ;;  %vm407_vm6 = vcmask 523264  }
  0xdc   : > { %v288_v22 = vpop.permute.xlu1 %287  ;;  %v286_v23 = vpop.permute.xlu0 %285 }
  0xdd   : > { %v290_v33 = vsel %vm289_vm5, %v286_v23, %v288_v22  ;;  %v334_v40 = vsel %vm332_vm8, %v331_v36, %v288_v22  ;;  %vm399_vm5 = vcmask 588800  }
  0xde   : > { %v333_v42 = vsel %vm332_vm8, %v330_v39, %v290_v33  ;;  %vm423_vm8 = vcmask 392192  }
  0xe0   : > { %v298_v25 = vpop.permute.xlu1 %297  ;;  %v296_v26 = vpop.permute.xlu0 %295 }
  0xe1   : > { %v300_v38 = vsel %vm299_vm7, %v296_v26, %v298_v25  ;;  %v337_v43 = vsel %vm335_vm10, %v334_v40, %v298_v25  ;;  %vm415_vm7 = vcmask 457728  }
  0xe2   : > { %v336_v44 = vsel %vm335_vm10, %v333_v42, %v300_v38  ;;  %vm439_vm10 = vcmask 261120  }
  0xe4   : > { %v308_v34 = vpop.permute.xlu1 %307  ;;  %v306_v35 = vpop.permute.xlu0 %305 }
  0xe5   : > { %v310_v41 = vsel %vm309_vm9, %v306_v35, %v308_v34  ;;  %v340_v45 = vsel %vm338_vm11, %v337_v43, %v308_v34  ;;  %vm431_vm9 = vcmask 326656   ;;  %v467_v43 = vld [vmem:[#allocation3] sm:$0xf] }
  0xe6   : > { %v339_v48 = vsel %vm338_vm11, %v336_v44, %v310_v41  ;;  %vm447_vm11 = vcmask 195584  }
  0xe8   : > { %v318_v46 = vpop.permute.xlu1 %317  ;;  %v316_v47 = vpop.permute.xlu0 %315 }
  0xe9   : > { %v343_v49 = vsel %vm341_vm12, %v340_v45, %v318_v46  ;;  %v320_v50 = vsel %vm319_vm13, %v316_v47, %v318_v46  ;;  %v2342_v47 = vand.u32 4294901760, %v467_v43  ;;  %vm463_vm13 = vcmask 64512  }
  0xea   : > { %v2231_v51 = vsel %vm341_vm12, %v339_v48, %v320_v50  ;;  %349 = vrot.lane.b32.xlu1 %v343_v49, %s2003_s8  ;;  %vm455_vm12 = vcmask 130048  }
  0xeb   : > { %347 = vrot.lane.b32.xlu0 %v2231_v51, %s2003_s8  ;;  %v503_v58 = vand.u32 4294901760, %v2231_v51  ;;  %v2363_v59 = vsub.f32 %v467_v43, %v2342_v47  ;;  %s1276_s8 = sshll.u32 %s1983_s15, 6  ;;  %s2022_s15 = smov [#allocation8]  }
  0xee   : > { %357 = vrot.lane.b32.xlu1 %v343_v49, %s2004_s11 }
  0xef   : > { %355 = vrot.lane.b32.xlu0 %v2231_v51, %s2004_s11  ;;  %s239_s11 = scalar_lea.vmem [#allocation8], %s1273_s7 }
  0xf2   : > { %365 = vrot.lane.b32.xlu1 %v343_v49, %s2005_s21 }
  0xf3   : > { %363 = vrot.lane.b32.xlu0 %v2231_v51, %s2005_s21  ;;  %s1159_s21 = sshll.u32 %s239_s11, 4  ;;  %s2571_s21 = int_to_ptr.vmem [resolvable:$true] %s1159_s21 }
  0xf6   : > { %373 = vrot.lane.b32.xlu1 %v343_v49, %s2006_s24 }
  0xf7   : > { %371 = vrot.lane.b32.xlu0 %v2231_v51, %s2006_s24 }
  0xfa   : > { %381 = vrot.lane.b32.xlu1 %v343_v49, %s2007_s6 }
  0xfb   : > { %379 = vrot.lane.b32.xlu0 %v2231_v51, %s2007_s6 }
  0xfe   : > { %389 = vrot.lane.b32.xlu1 %v343_v49, %s2008_s20 }
  0xff   : > { %387 = vrot.lane.b32.xlu0 %v2231_v51, %s2008_s20  ;;  %s2569_s20 = scalar_lea.hbm %s2621_s3, %s1276_s8 }
 0x102   : > { %397 = vrot.lane.b32.xlu1 %v343_v49, %s2009_s9 }
 0x103   : > { %395 = vrot.lane.b32.xlu0 %v2231_v51, %s2009_s9  ;;  %s1145_s9 = scalar_lea.sflag [#allocation5], %s2198_s10 }
 0x106   : > { %405 = vrot.lane.b32.xlu1 %v343_v49, %s2010_s29 }
 0x107   : > { %403 = vrot.lane.b32.xlu0 %v2231_v51, %s2010_s29  ;;  %s1905_s29 = scalar_lea.vmem %s2571_s21, 64 }
 0x108   : > { %p1906_p6 = scmp.ne.s32.totalorder %s2571_s21, %s1905_s29 }
 0x10a   : > { %413 = vrot.lane.b32.xlu1 %v343_v49, %s2011_s18  ;;  %p1907_p8 = pnand %p1906_p6, %p2144_p13 }
 0x10b   : > { %411 = vrot.lane.b32.xlu0 %v2231_v51, %s2011_s18  ;;  %s1909_s18 = sshll.u32 %s2022_s15, 4  ;;  %s1910_s18 = int_to_ptr.vmem [resolvable:$false] %s1909_s18 }
 0x10c   : > { %p1908_p9 = pneg %p1907_p8  ;;  %p1912_p12 = scmp.lt.s32.totalorder %s2571_s21, %s1910_s18 }
 0x10e   : > { %421 = vrot.lane.b32.xlu1 %v343_v49, %s2012_s19 }
 0x10f   : > { %419 = vrot.lane.b32.xlu0 %v2231_v51, %s2012_s19  ;;  %s1911_s19 = scalar_lea.vmem %s1910_s18, 128 }
 0x110   : > { %p1913_p0 = scmp.lt.s32.totalorder %s1911_s19, %s1905_s29 }
 0x112   : > { %429 = vrot.lane.b32.xlu1 %v343_v49, %s2013_s25  ;;  %p1914_p5 = por %p1913_p0, %p1912_p12 }
 0x113   : > { %427 = vrot.lane.b32.xlu0 %v2231_v51, %s2013_s25 }
 0x114   : > { %p1915_p10 = pnand %p1914_p5, %p1908_p9 }
 0x116   : > { %437 = vrot.lane.b32.xlu1 %v343_v49, %s2014_s22 }
 0x117   : > { %435 = vrot.lane.b32.xlu0 %v2231_v51, %s2014_s22 }
 0x11a   : > { %445 = vrot.lane.b32.xlu1 %v343_v49, %s2015_s26 }
 0x11b   : > { %443 = vrot.lane.b32.xlu0 %v2231_v51, %s2015_s26 }
 0x11e   : > { %453 = vrot.lane.b32.xlu1 %v343_v49, %s2016_s4 }
 0x11f   : > { %451 = vrot.lane.b32.xlu0 %v2231_v51, %s2016_s4 }
 0x122   : > { %461 = vrot.lane.b32.xlu1 %v343_v49, %s2019_s30 }
 0x123   : > { %459 = vrot.lane.b32.xlu0 %v2231_v51, %s2019_s30 }
 0x127   : > { %487 = vperm.xlu0 %1846, %v484_v56  }
 0x15c   : > { %v350_v53 = vpop.permute.xlu1 %349 }
 0x15d   : > { %v348_v54 = vpop.permute.xlu0 %347 }
 0x15e   : > { %v2252_v55 = vsel %vm351_vm15, %v348_v54, %v350_v53  ;;  %v2358_v54 = vsub.f32 %v2231_v51, %v503_v58 }
 0x15f   : > { %v506_v57 = vand.u32 4294901760, %v2252_v55 }
 0x160   : > { %v358_v60 = vpop.permute.xlu1 %357 }
 0x161   : > { %v356_v61 = vpop.permute.xlu0 %355  ;;  %v2260_v62 = vpack.c.bf16 %v506_v57, %v503_v58  ;;  %v2353_v50 = vsub.f32 %v2252_v55, %v506_v57  ;;  %v585_v58 = vand.u32 4294901760, %v2363_v59 }
 0x162   : > { %v2264_v63 = vsel %vm359_vm0, %v356_v61, %v358_v60 }
 0x163   : > { %1594 = vmatpush3.bf16.msra.mxu1 %v2260_v62  ;;  %1666 = vmatpush3.bf16.msra.mxu0 %v2260_v62  ;;  %v509_v4 = vand.u32 4294901760, %v2264_v63 }
 0x164   : > { %v366_v0 = vpop.permute.xlu1 %365  ;;  %1595 = vmatprep.subr.bf16.mxu1 %v2002_v30  ;;  %1667 = vmatprep.subr.bf16.mxu0 %v2002_v30 }
 0x165   : > { %v364_v1 = vpop.permute.xlu0 %363 }
 0x166   : > { %v2268_v2 = vsel %vm367_vm1, %v364_v1, %v366_v0  ;;  %v603_v1 = vand.u32 4294901760, %v2353_v50 }
 0x167   : > { %v512_v5 = vand.u32 4294901760, %v2268_v2 }
 0x168   : > { %v374_v6 = vpop.permute.xlu1 %373 }
 0x169   : > { %v372_v7 = vpop.permute.xlu0 %371  ;;  %v2276_v8 = vpack.c.bf16 %v512_v5, %v509_v4  ;;  %v2371_v55 = vsub.f32 %v2268_v2, %v512_v5 }
 0x16a   : > { %v2280_v9 = vsel %vm375_vm2, %v372_v7, %v374_v6  ;;  %v596_v6 = vand.u32 4294901760, %v2358_v54  ;;  %v2384_v7 = vsub.f32 %v2264_v63, %v509_v4 }
 0x16b   : > { %1597 = vmatpush3.bf16.msra.mxu1 %v2276_v8  ;;  %1669 = vmatpush3.bf16.msra.mxu0 %v2276_v8  ;;  %v515_v13 = vand.u32 4294901760, %v2280_v9 }
 0x16c   : > { %v382_v10 = vpop.permute.xlu1 %381  ;;  %1598 = vmatprep.subr.bf16.mxu1 %v2002_v30  ;;  %1670 = vmatprep.subr.bf16.mxu0 %v2002_v30  ;;  %v1689_v43 = vpack.c.bf16 %v603_v1, %v596_v6 }
 0x16d   : > { %v380_v11 = vpop.permute.xlu0 %379 }
 0x16e   : > { %v2284_v12 = vsel %vm383_vm3, %v380_v11, %v382_v10  ;;  %v604_v10 = vsub.f32 %v2353_v50, %v603_v1  ;;  %v617_v11 = vand.u32 4294901760, %v2371_v55 }
 0x16f   : > { %v518_v14 = vand.u32 4294901760, %v2284_v12 }
 0x170   : > { %v390_v15 = vpop.permute.xlu1 %389 }
 0x171   : > { %v388_v16 = vpop.permute.xlu0 %387  ;;  %v2292_v17 = vpack.c.bf16 %v518_v14, %v515_v13  ;;  %v2397_v63 = vsub.f32 %v2284_v12, %v518_v14  ;;  %v605_v14 = vand.u32 4294901760, %v604_v10 }
 0x172   : > { %v2296_v18 = vsel %vm391_vm4, %v388_v16, %v390_v15  ;;  %v586_v16 = vsub.f32 %v2363_v59, %v585_v58 }
 0x173   : > { %1600 = vmatpush3.bf16.msra.mxu1 %v2292_v17  ;;  %1672 = vmatpush3.bf16.msra.mxu0 %v2292_v17  ;;  %v521_v22 = vand.u32 4294901760, %v2296_v18 }
 0x174   : > { %v398_v19 = vpop.permute.xlu1 %397  ;;  %1601 = vmatprep.subr.bf16.mxu1 %v2002_v30  ;;  %1673 = vmatprep.subr.bf16.mxu0 %v2002_v30 }
 0x175   : > { %v396_v20 = vpop.permute.xlu0 %395 }
 0x176   : > { %v2300_v21 = vsel %vm399_vm5, %v396_v20, %v398_v19  ;;  %v597_v19 = vsub.f32 %v2358_v54, %v596_v6  ;;  %v610_v20 = vand.u32 4294901760, %v2384_v7 }
 0x177   : > { %v524_v23 = vand.u32 4294901760, %v2300_v21 }
 0x178   : > { %v406_v24 = vpop.permute.xlu1 %405 }
 0x179   : > { %v404_v25 = vpop.permute.xlu0 %403  ;;  %v2308_v26 = vpack.c.bf16 %v524_v23, %v521_v22  ;;  %v2414_v12 = vsub.f32 %v2300_v21, %v524_v23  ;;  %v611_v21 = vsub.f32 %v2384_v7, %v610_v20 }
 0x17a   : > { %v2312_v27 = vsel %vm407_vm6, %v404_v25, %v406_v24  ;;  %v2407_v24 = vsub.f32 %v2280_v9, %v515_v13  ;;  %v2427_v13 = vsub.f32 %v2296_v18, %v521_v22 }
 0x17b   : > { %1603 = vmatpush3.bf16.msra.mxu1 %v2308_v26  ;;  %1675 = vmatpush3.bf16.msra.mxu0 %v2308_v26  ;;  %v527_v32 = vand.u32 4294901760, %v2312_v27 }
 0x17c   : > { %v414_v28 = vpop.permute.xlu1 %413  ;;  %1604 = vmatprep.subr.bf16.mxu1 %v2002_v30  ;;  %1676 = vmatprep.subr.bf16.mxu0 %v2002_v30  ;;  %v624_v23 = vand.u32 4294901760, %v2407_v24 }
 0x17d   : > { %v412_v29 = vpop.permute.xlu0 %411  ;;  %v2447_v1 = vsub.f32 %v2312_v27, %v527_v32 }
 0x17e   : > { %v2316_v31 = vsel %vm415_vm7, %v412_v29, %v414_v28  ;;  %v618_v29 = vsub.f32 %v2371_v55, %v617_v11 }
 0x17f   : > { %v530_v33 = vand.u32 4294901760, %v2316_v31  ;;  %v652_v10 = vand.u32 4294901760, %v2447_v1 }
 0x180   : > { %v422_v34 = vpop.permute.xlu1 %421 }
 0x181   : > { %v420_v35 = vpop.permute.xlu0 %419  ;;  %v2324_v36 = vpack.c.bf16 %v530_v33, %v527_v32  ;;  %v2440_v22 = vsub.f32 %v2316_v31, %v530_v33  ;;  %v1692_v31 = vpack.c.bf16 %v617_v11, %v610_v20 }
 0x182   : > { %v2328_v37 = vsel %vm423_vm8, %v420_v35, %v422_v34  ;;  %v631_v34 = vand.u32 4294901760, %v2397_v63  ;;  %v587_v35 = vand.u32 4294901760, %v586_v16 }
 0x183   : > { %1606 = vmatpush3.bf16.msra.mxu1 %v2324_v36  ;;  %1678 = vmatpush3.bf16.msra.mxu0 %v2324_v36  ;;  %v533_v41 = vand.u32 4294901760, %v2328_v37 }
 0x184   : > { %v430_v38 = vpop.permute.xlu1 %429  ;;  %1607 = vmatprep.subr.bf16.mxu1 %v2002_v30  ;;  %1679 = vmatprep.subr.bf16.mxu0 %v2002_v30  ;;  %v632_v18 = vsub.f32 %v2397_v63, %v631_v34 }
 0x185   : > { %v428_v39 = vpop.permute.xlu0 %427  ;;  %v2467_v11 = vsub.f32 %v2328_v37, %v533_v41 }
 0x186   : > { %v2332_v40 = vsel %vm431_vm9, %v428_v39, %v430_v38  ;;  %v598_v38 = vand.u32 4294901760, %v597_v19  ;;  %v645_v39 = vand.u32 4294901760, %v2414_v12  ;;  %v633_v33 = vand.u32 4294901760, %v632_v18 }
 0x187   : > { %v536_v42 = vand.u32 4294901760, %v2332_v40 }
 0x188   : > { %v438_v44 = vpop.permute.xlu1 %437 }
 0x189   : > { %v436_v45 = vpop.permute.xlu0 %435  ;;  %v2340_v46 = vpack.c.bf16 %v536_v42, %v533_v41  ;;  %v2456_v6 = vsub.f32 %v2332_v40, %v536_v42  ;;  %v1695_v42 = vpack.c.bf16 %v631_v34, %v624_v23  ;;  %v653_v41 = vsub.f32 %v2447_v1, %v652_v10 }
 0x18a   : > { %v2346_v48 = vsel %vm439_vm10, %v436_v45, %v438_v44  ;;  %v619_v44 = vand.u32 4294901760, %v618_v29  ;;  %v1617_v45 = vpack.c.bf16 %v605_v14, %v598_v38  ;;  %v666_v14 = vand.u32 4294901760, %v2467_v11 }
 0x18b   : > { %1609 = vmatpush3.bf16.msra.mxu1 %v2340_v46  ;;  %1681 = vmatpush3.bf16.msra.mxu0 %v2340_v46  ;;  %v539_v60 = vand.u32 4294901760, %v2346_v48  ;;  %v673_v16 = vand.u32 4294901760, %v2456_v6 }
 0x18c   : > { %v446_v49 = vpop.permute.xlu1 %445  ;;  %1610 = vmatprep.subr.bf16.mxu1 %v2002_v30  ;;  %1682 = vmatprep.subr.bf16.mxu0 %v2002_v30 }
 0x18d   : > { %v444_v53 = vpop.permute.xlu0 %443  ;;  %v2483_v29 = vsub.f32 %v2346_v48, %v539_v60  ;;  %v654_v48 = vand.u32 4294901760, %v653_v41 }
 0x18e   : > { %v2360_v56 = vsel %vm447_vm11, %v444_v53, %v446_v49  ;;  %v638_v49 = vand.u32 4294901760, %v2427_v13  ;;  %v612_v53 = vand.u32 4294901760, %v611_v21 }
 0x18f   : > { %v542_v61 = vand.u32 4294901760, %v2360_v56  ;;  %v680_v38 = vand.u32 4294901760, %v2483_v29 }
 0x190   : > { %v454_v0 = vpop.permute.xlu1 %453  ;;  %v639_v27 = vsub.f32 %v2427_v13, %v638_v49 }
 0x191   : > { %v452_v51 = vpop.permute.xlu0 %451  ;;  %v2377_v57 = vpack.c.bf16 %v542_v61, %v539_v60  ;;  %v2476_v19 = vsub.f32 %v2360_v56, %v542_v61  ;;  %v1698_v56 = vpack.c.bf16 %v645_v39, %v638_v49  ;;  %v667_v60 = vsub.f32 %v2467_v11, %v666_v14 }
 0x192   : > { %v2388_v2 = vsel %vm455_vm12, %v452_v51, %v454_v0  ;;  %v625_v0 = vsub.f32 %v2407_v24, %v624_v23  ;;  %v646_v51 = vsub.f32 %v2414_v12, %v645_v39  ;;  %v640_v37 = vand.u32 4294901760, %v639_v27 }
 0x193   : > { %1612 = vmatpush3.bf16.msra.mxu1 %v2377_v57  ;;  %1684 = vmatpush3.bf16.msra.mxu0 %v2377_v57  ;;  %v545_v25 = vand.u32 4294901760, %v2388_v2  ;;  %v687_v21 = vand.u32 4294901760, %v2476_v19  ;;  %v681_v49 = vsub.f32 %v2483_v29, %v680_v38 }
 0x194   : > { %v462_v5 = vpop.permute.xlu1 %461  ;;  %1613 = vmatprep.subr.bf16.mxu1 %v2002_v30  ;;  %1685 = vmatprep.subr.bf16.mxu0 %v2002_v30  ;;  %v626_v32 = vand.u32 4294901760, %v625_v0  ;;  %v647_v40 = vand.u32 4294901760, %v646_v51  ;;  %v1704_v51 = vpack.c.bf16 %v673_v16, %v666_v14 }
 0x195   : > { %v460_v4 = vpop.permute.xlu0 %459  ;;  %v1707_v27 = vpack.c.bf16 %v687_v21, %v680_v38 }
 0x196   : > { %v2399_v15 = vsel %vm463_vm13, %v460_v4, %v462_v5  ;;  %v1620_v5 = vpack.c.bf16 %v619_v44, %v612_v53  ;;  %v1623_v20 = vpack.c.bf16 %v633_v33, %v626_v32  ;;  %v1626_v34 = vpack.c.bf16 %v647_v40, %v640_v37 }
 0x197   : > { %v548_v28 = vand.u32 4294901760, %v2399_v15 }
 0x199   : > { %v2422_v9 = vpack.c.bf16 %v548_v28, %v545_v25  ;;  %v2492_v23 = vsub.f32 %v2399_v15, %v548_v28  ;;  %v688_v15 = vsub.f32 %v2476_v19, %v687_v21 }
 0x19b   : > { %1615 = vmatpush3.bf16.msra.mxu1 %v2422_v9  ;;  %1687 = vmatpush3.bf16.msra.mxu0 %v2422_v9  ;;  %v701_v28 = vand.u32 4294901760, %v2492_v23 }
 0x19c   : > { %1616 = vmatprep.subr.bf16.mxu1 %v2002_v30  ;;  %1688 = vmatprep.subr.bf16.mxu0 %v2002_v30 }
 0x19e   : > { %1415 = vmatmul.mubr.f32.vlgmr.msra.gmra.mrb[0].mxu1 %v587_v35  ;;  %1520 = vmatmul.mubr.f32.vlgmr.msra.gmra.mrb[0].mxu0 %v585_v58  ;;  %v659_v58 = vand.u32 4294901760, %v2440_v22  ;;  %v674_v35 = vsub.f32 %v2456_v6, %v673_v16 }
 0x19f   : > { %1618 = vmatpush3.bf16.msra.mxu1 %v1617_v45  ;;  %1690 = vmatpush3.bf16.msra.mxu0 %v1689_v43  ;;  %v2499_v43 = vsub.f32 %v2388_v2, %v545_v25  ;;  %v668_v45 = vand.u32 4294901760, %v667_v60  ;;  %v689_v2 = vand.u32 4294901760, %v688_v15  ;;  %v702_v25 = vsub.f32 %v2492_v23, %v701_v28 }
 0x1a0   : > { %1619 = vmatprep.subr.bf16.mxu1 %v2002_v30  ;;  %1691 = vmatprep.subr.bf16.mxu0 %v2002_v30  ;;  %v660_v4 = vsub.f32 %v2440_v22, %v659_v58  ;;  %v1701_v39 = vpack.c.bf16 %v659_v58, %v652_v10  ;;  %v675_v44 = vand.u32 4294901760, %v674_v35 }
 0x1a1   : > { %1449 = vmatprep.mubr.msk.f32.mxu1 %vm2017_vm14, %v2018_v52  ;;  %1554 = vmatprep.mubr.msk.f32.mxu0 %vm2017_vm14, %v2018_v52  ;;  %v694_v53 = vand.u32 4294901760, %v2499_v43  ;;  %v703_v58 = vand.u32 4294901760, %v702_v25 }
 0x1a2   : > { %v661_v61 = vand.u32 4294901760, %v660_v4  ;;  %v1632_v0 = vpack.c.bf16 %v675_v44, %v668_v45  ;;  %v1644_v4 = vpack.c.bf16 %v2371_v55, %v2384_v7 }
 0x1a3   : > { %1621 = vmatpush3.bf16.msra.mxu1 %v1620_v5  ;;  %1693 = vmatpush3.bf16.msra.mxu0 %v1692_v31  ;;  %v682_v31 = vand.u32 4294901760, %v681_v49  ;;  %v695_v33 = vsub.f32 %v2499_v43, %v694_v53  ;;  %v1710_v40 = vpack.c.bf16 %v701_v28, %v694_v53 }
 0x1a4   : > { %1622 = vmatprep.subr.bf16.mxu1 %v2002_v30  ;;  %1694 = vmatprep.subr.bf16.mxu0 %v2002_v30  ;;  %v1629_v18 = vpack.c.bf16 %v661_v61, %v654_v48 }
 0x1a5   : > { %v1635_v5 = vpack.c.bf16 %v689_v2, %v682_v31  ;;  %v696_v32 = vand.u32 4294901760, %v695_v33 }
 0x1a7   : > { %1624 = vmatpush3.bf16.msra.mxu1 %v1623_v20  ;;  %1696 = vmatpush3.bf16.msra.mxu0 %v1695_v42  ;;  %v1638_v10 = vpack.c.bf16 %v703_v58, %v696_v32  ;;  %v1641_v42 = vpack.c.bf16 %v2353_v50, %v2358_v54  ;;  %v493_v54 = vlaneseq }
 0x1a8   : > { %1625 = vmatprep.subr.bf16.mxu1 %v2002_v30  ;;  %1697 = vmatprep.subr.bf16.mxu0 %v2002_v30 }
 0x1ab   : > { %1627 = vmatpush3.bf16.msra.mxu1 %v1626_v34  ;;  %1699 = vmatpush3.bf16.msra.mxu0 %v1698_v56 }
 0x1ac   : > { %1628 = vmatprep.subr.bf16.mxu1 %v2002_v30  ;;  %1700 = vmatprep.subr.bf16.mxu0 %v2002_v30 }
 0x1af   : > { %1630 = vmatpush3.bf16.msra.mxu1 %v1629_v18  ;;  %1702 = vmatpush3.bf16.msra.mxu0 %v1701_v39 }
 0x1b0   : > { %1631 = vmatprep.subr.bf16.mxu1 %v2002_v30  ;;  %1703 = vmatprep.subr.bf16.mxu0 %v2002_v30 }
 0x1b3   : > { %1633 = vmatpush3.bf16.msra.mxu1 %v1632_v0  ;;  %1705 = vmatpush3.bf16.msra.mxu0 %v1704_v51 }
 0x1b4   : > { %1634 = vmatprep.subr.bf16.mxu1 %v2002_v30  ;;  %1706 = vmatprep.subr.bf16.mxu0 %v2002_v30 }
 0x1b7   : > { %1636 = vmatpush3.bf16.msra.mxu1 %v1635_v5  ;;  %1708 = vmatpush3.bf16.msra.mxu0 %v1707_v27 }
 0x1b8   : > { %1637 = vmatprep.subr.bf16.mxu1 %v2002_v30  ;;  %1709 = vmatprep.subr.bf16.mxu0 %v2002_v30 }
 0x1bb   : > { %1639 = vmatpush3.bf16.msra.mxu1 %v1638_v10  ;;  %1711 = vmatpush3.bf16.msra.mxu0 %v1710_v40 }
 0x1bc   : > { %1640 = vmatprep.subr.bf16.mxu1 %v2002_v30  ;;  %1712 = vmatprep.subr.bf16.mxu0 %v2002_v30 }
 0x1be   : > { %1450 = vmatmul.mubr.f32.vlgmr.msra.gmra.mrb[0].mxu1 %v2342_v47  ;;  %1555 = vmatmul.mubr.f32.vlgmr.msra.gmra.mrb[0].mxu0 %v2342_v47 }
 0x1bf   : > { %1642 = vmatpush3.bf16.msra.mxu1 %v1641_v42  ;;  %1714 = vmatpush3.bf16.msra.mxu0 %v2260_v62  ;;  %v1647_v62 = vpack.c.bf16 %v2397_v63, %v2407_v24 }
 0x1c0   : > { %1643 = vmatprep.subr.bf16.mxu1 %v2002_v30  ;;  %1715 = vmatprep.subr.bf16.mxu0 %v2002_v30 }
 0x1c1   : > { %1484 = vmatprep.mubr.msk.f32.mxu1 %vm2017_vm14, %v2018_v52  ;;  %1589 = vmatprep.mubr.msk.f32.mxu0 %vm2017_vm14, %v2018_v52  ;;  %v1650_v52 = vpack.c.bf16 %v2414_v12, %v2427_v13 }
 0x1c3   : > { %1645 = vmatpush3.bf16.msra.mxu1 %v1644_v4  ;;  %1717 = vmatpush3.bf16.msra.mxu0 %v2276_v8  ;;  %v1653_v8 = vpack.c.bf16 %v2440_v22, %v2447_v1 }
 0x1c4   : > { %1646 = vmatprep.subr.bf16.mxu1 %v2002_v30  ;;  %1718 = vmatprep.subr.bf16.mxu0 %v2002_v30 }
 0x1c7   : > { %1648 = vmatpush3.bf16.msra.mxu1 %v1647_v62  ;;  %1720 = vmatpush3.bf16.msra.mxu0 %v2292_v17  ;;  %v1656_v17 = vpack.c.bf16 %v2456_v6, %v2467_v11 }
 0x1c8   : > { %1649 = vmatprep.subr.bf16.mxu1 %v2002_v30  ;;  %1721 = vmatprep.subr.bf16.mxu0 %v2002_v30 }
 0x1cb   : > { %1651 = vmatpush3.bf16.msra.mxu1 %v1650_v52  ;;  %1723 = vmatpush3.bf16.msra.mxu0 %v2308_v26  ;;  %v1659_v26 = vpack.c.bf16 %v2476_v19, %v2483_v29 }
 0x1cc   : > { %1652 = vmatprep.subr.bf16.mxu1 %v2002_v30  ;;  %1724 = vmatprep.subr.bf16.mxu0 %v2002_v30 }
 0x1cf   : > { %1654 = vmatpush3.bf16.msra.mxu1 %v1653_v8  ;;  %1726 = vmatpush3.bf16.msra.mxu0 %v2324_v36  ;;  %v1662_v36 = vpack.c.bf16 %v2492_v23, %v2499_v43 }
 0x1d0   : > { %1655 = vmatprep.subr.bf16.mxu1 %v2002_v30  ;;  %1727 = vmatprep.subr.bf16.mxu0 %v2002_v30 }
 0x1d3   : > { %1657 = vmatpush3.bf16.msra.mxu1 %v1656_v17  ;;  %1729 = vmatpush3.bf16.msra.mxu0 %v2340_v46  ;;  %v2021_v46 = vmov 839922192  }
 0x1d4   : > { %1658 = vmatprep.subr.bf16.mxu1 %v2002_v30  ;;  %1730 = vmatprep.subr.bf16.mxu0 %v2002_v30  ;;  %v491_v50 = vunpack.c.l.s4 %v2021_v46 }
 0x1d6   : > { %v492_v55 = vunpack.c.0.s8 %v491_v50 }
 0x1d7   : > { %1660 = vmatpush3.bf16.msra.mxu1 %v1659_v26  ;;  %1732 = vmatpush3.bf16.msra.mxu0 %v2377_v57  ;;  %v494_v57 = vshrl.u32 %v493_v54, 7 }
 0x1d8   : > { %1661 = vmatprep.subr.bf16.mxu1 %v2002_v30  ;;  %1733 = vmatprep.subr.bf16.mxu0 %v2002_v30  ;;  %v488_v30 = vpop.permute.xlu0 %487 }
 0x1d9   : > { %v495_v7 = vsub.s32 %v492_v55, %v494_v57  ;;  %v499_v63 = vsub.s32 0, %v494_v57 }
 0x1db   : > { %1663 = vmatpush3.bf16.msra.mxu1 %v1662_v36  ;;  %1735 = vmatpush3.bf16.msra.mxu0 %v2422_v9  ;;  %v496_v24 = vrot.slane %v488_v30, %v495_v7  ;;  %v500_v12 = vrot.slane %v2211_v3, %v499_v63 }
 0x1dd   : > { %v501_v13 = vmul.f32 %v500_v12, %v496_v24 }
 0x1de   : > { %1485 = vmatmul.mubr.f32.vlgmr.msra.gmra.mrb[0].mxu1 %v2363_v59  ;;  %1590 = vmatmul.mubr.f32.vlgmr.msra.gmra.mrb[0].mxu0 %v2342_v47 }
 0x2b1   : > { %v844_v9 = vpop.f32.mrb[0].mxu1  ;;  %v1139_v59 = vpop.f32.mrb[0].mxu0 }
 0x2b2   : > { %v1736_v47 = vadd.f32 %v844_v9, %v501_v13  ;;  %v1486_v22 = vpop.f32.mrb[1].mxu1  ;;  %v1591_v1 = vpop.f32.mrb[1].mxu0 }
 0x2b4   : > { %v1737_v6 = vadd.f32 %v1736_v47, %v1139_v59 }
 0x2b6   : > { %1143 = vst [vmem:[%s239_s11] sm:$0xf] %v1737_v6 }
 0x2b7   : > { %1918 = shalt.err (!%p1915_p10)
}
 0x2b8   : > { %s1919_s10 = scalar_lea.hbm %s2569_s20, 64  ;;  %s1923_s26 = scalar_lea.hbm %s2621_s3, 128 }
 0x2b9   : > { %p1920_p1 = scmp.ne.s32.totalorder %s2569_s20, %s1919_s10  ;;  %p1924_p3 = scmp.lt.u32.totalorder %s2569_s20, %s2621_s3 }
 0x2ba   : > { %p1925_p4 = scmp.lt.u32.totalorder %s1923_s26, %s1919_s10  ;;  %p1927_p6 = scmp.lt.u32.totalorder %s1919_s10, %s2569_s20 }
 0x2bb   : > { %p1921_p2 = pnand %p1920_p1, %p2144_p13 }
 0x2bc   : > { %p1926_p11 = por %p1925_p4, %p1924_p3 }
 0x2bd   : > { %p1922_p7 = pneg %p1921_p2 }
 0x2be   : > { %p1928_p8 = por %p1927_p6, %p1926_p11 }
 0x2c0   : > { %p1929_p9 = pnand %p1928_p8, %p1922_p7 }
 0x2c2   : > { %1932 = shalt.err (!%p1929_p9)
}
 0x2c3   : > { %1752 = dma.vmem_to_hbm [thread:$0]  (%p2144_p13), %s2571_s21, 64, %s2569_s20, %s1145_s9  }
 0x2c4 PF: > { %s1171_s7 = sand.u32 1, %s1971_s12   ;;  %p2640_p12 = scmp.ne.s32.totalorder %s2629_s23, 0 }
 0x2c5   : > { %p2641_p0 = scmp.ge.s32.totalorder %s1991_s17, 2  ;;  %s1172_s8 = scalar_lea.sflag [#allocation5], %s1171_s7 }
 0x2c7   : > { %p1763_p5 = pnand %p2641_p0, %p2640_p12 }
 0x2c9   : > { %1966 = dma.done.wait (!%p1763_p5), %s1172_s8, 64  }
 0x2ca   : > { %1968 = vsyncadd (!%p1763_p5), %s1172_s8, 4294967232  ;;  %s20_s17 = sadd.s32 1, %s1991_s17   ;;  %s2642_s12 = smov %s1975_s13 }
 0x2cb   : > { %p17_p10 = scmp.ge.s32.totalorder %s20_s17, 4   ;;  %s2643_s13 = smov %s1979_s14 }
 0x2cc   : > { %s2644_s14 = smov %s2152_s5  ;;  %s2645_s15 = smov %s1987_s16 }
 0x2cd   : > { %s2646_s16 = smov %s2648_s28  ;;  %19 = sbr.rel (!%p17_p10) target bundleno = 7 (0x7), region = 85 }
 0x2d4   :  { %1177 = vsyncpa [#allocation4], 1 }
 0x2d5   :  { %1179 = vsyncpa [#allocation4 + $0x1], 1 }
 0x2d6   :  { %1180 = vsyncpa [#allocation7], 1 }
 0x2d7   :  { %1182 = vsyncpa [#allocation7 + $0x1], 1 }
 0x2d8   :  { %1183 = vsyncpa [#allocation5], 1 }
 0x2d9   :  { %1185 = vsyncpa [#allocation5 + $0x1], 1 }

</bundles_post_ra>
